<compile_context>
chip_gen: v6e
topology: v6e:2x2x1
jax: 0.10.0
libtpu: 0.0.40
codegen_flags: <defaults>
</compile_context>

<pallas_src>
import functools

import jax
import jax.numpy as jnp
from jax import lax
from jax.experimental import pallas as pl
from jax.experimental.pallas import tpu as pltpu


# ----------------------------------------------------------------------------
# Kernels
# ----------------------------------------------------------------------------

def _snu_seq_kernel(x_ref, w_ref, b_ref, y_out_ref, h_out_ref,
                    h_sc, y_sc, pre_sc, *, decay):
    """Fused sequence kernel.  Grid = (H tiles, time chunks); chunks innermost.

    x_ref:  (TB*B, I)  f32  -- one time chunk of inputs, flattened over (t, b)
    w_ref:  (I, th)    bf16 -- resident in VMEM across all chunks
    b_ref:  (1, th)    f32  -- resident in VMEM across all chunks
    y/h_out_ref: (TB, B, th)
    h_sc, y_sc: (B, th) f32 -- carried recurrent state
    pre_sc: (TB*B, th) f32  -- pre-activation scratch for the chunk
    """
    chunk = pl.program_id(1)
    tb, batch, _ = h_out_ref.shape

    # Zero-init the recurrent state at the start of each H tile's time loop
    # (no zeros DMA'd from HBM).
    @pl.when(chunk == 0)
    def _():
        h_sc[...] = jnp.zeros_like(h_sc)
        y_sc[...] = jnp.zeros_like(y_sc)

    # One big MXU matmul for the whole time chunk (bf16 operands, f32 acc).
    # x is read from HBM as f32 and cast to bf16 on the VPU here.
    pre_sc[...] = jnp.dot(x_ref[...].astype(w_ref.dtype), w_ref[...],
                          preferred_element_type=jnp.float32)

    # Fold the bias into the spike threshold once per chunk.
    neg_b = -b_ref[...]                       # (1, th), broadcasts over batch

    def step(t, carry):
        h_prev, y_prev = carry
        row = pl.multiple_of(t * batch, batch)
        pre_t = pre_sc[pl.ds(row, batch), :]              # (B, th)
        # decay * h * (1 - y) with binary y == keep decayed h only where no spike.
        leak = jnp.where(y_prev > 0.0, 0.0, decay * h_prev)
        h_new = jnp.maximum(pre_t + leak, 0.0)
        y_new = (h_new > neg_b).astype(jnp.float32)
        h_out_ref[t] = h_new.astype(h_out_ref.dtype)
        y_out_ref[t] = y_new.astype(y_out_ref.dtype)
        return h_new, y_new

    h_last, y_last = lax.fori_loop(0, tb, step, (h_sc[...], y_sc[...]),
                                   unroll=True)
    h_sc[...] = h_last
    y_sc[...] = y_last


def _snu_cell_kernel(x_ref, w_ref, b_ref, h_ref, yprev_ref,
                     out_y_ref, out_h_ref, *, decay):
    """Single timestep with a provided (hidden, output) state."""
    pre = jnp.dot(x_ref[...].astype(w_ref.dtype), w_ref[...],
                  preferred_element_type=jnp.float32)
    # Keep the exact module formula here (user-supplied `output` may be
    # anything, even though the module always produces binary spikes).
    h_new = jnp.maximum(pre + decay * h_ref[...] * (1.0 - yprev_ref[...]), 0.0)
    out_y_ref[...] = (h_new + b_ref[...] > 0.0).astype(out_y_ref.dtype)
    out_h_ref[...] = h_new.astype(out_h_ref.dtype)


def _snu_cell_kernel_nostate(x_ref, w_ref, b_ref, out_y_ref, out_h_ref, *, decay):
    """Single timestep, hidden/output = None (no zeros are DMA'd from HBM)."""
    del decay
    pre = jnp.dot(x_ref[...].astype(w_ref.dtype), w_ref[...],
                  preferred_element_type=jnp.float32)
    h_new = jnp.maximum(pre, 0.0)
    out_y_ref[...] = (h_new + b_ref[...] > 0.0).astype(out_y_ref.dtype)
    out_h_ref[...] = h_new.astype(out_h_ref.dtype)


# ----------------------------------------------------------------------------
# Tiling / VMEM helpers
# ----------------------------------------------------------------------------

def _pad(n, m):
    return -(-n // m) * m


def _pick_tile_h(H, max_tile=512, min_h_tiles=1):
    """Pick the hidden tile width.

    Prefers the full H (single lane-dense tile), otherwise 256-multiples
    (full v6e/v7x MXU output width) before 128-multiples.  `min_h_tiles >= 2`
    can be used on v7x to give both TensorCores a parallel block.
    """
    cap = max_tile
    if min_h_tiles > 1:
        cap = min(cap, max(128, H // min_h_tiles))
    if H <= cap:
        return H
    for step in (256, 128):
        start = (cap // step) * step
        for th in range(start, step - 1, -step):
            if H % th == 0:
                return th
    return H  # fallback: single full-width tile


def _pick_time_block(T, B, target_rows=256, max_tb=64):
    """Largest divisor of T (<= max_tb) whose chunk has ~target_rows MXU rows."""
    cap = max(1, min(max_tb, -(-2 * target_rows // max(B, 1))))
    best = 1
    for tb in range(1, T + 1):
        if T % tb == 0 and tb <= cap:
            best = tb
    return best


def _physical_vmem_cap():
    try:
        return int(pltpu.get_tpu_info().vmem_capacity_bytes)
    except Exception:
        return 64 * 1024 * 1024  # v7x-safe fallback


def _vmem_limit_bytes(est):
    """Always set an explicit scoped-VMEM limit, clamped to physical - headroom."""
    cap = _physical_vmem_cap()
    headroom = 8 * 1024 * 1024
    want = max(int(est * 1.5), 32 * 1024 * 1024)
    return max(min(want, cap - headroom), 4 * 1024 * 1024)


def _seq_vmem_estimate(tb, B, I, th, dot_dtype, y_dtype, h_dtype):
    """Layout-aware (8,128)-padded VMEM estimate for the sequence kernel."""
    db = jnp.dtype(dot_dtype).itemsize
    pack = max(1, 4 // db)                       # sublane packing factor
    x_blk = 2 * _pad(tb * B, 8) * _pad(I, 128) * 4          # x chunk, f32, 2-buf
    w_blk = 2 * _pad(I, 8 * pack) * _pad(th, 128) * db      # W, 2-buf
    b_blk = 2 * 8 * _pad(th, 128) * 4                       # bias (pads to 8 sublanes)
    oy = 2 * tb * _pad(B, 8) * _pad(th, 128) * jnp.dtype(y_dtype).itemsize
    oh = 2 * tb * _pad(B, 8) * _pad(th, 128) * jnp.dtype(h_dtype).itemsize
    scratch = (2 * _pad(B, 8) + _pad(tb * B, 8)) * _pad(th, 128) * 4
    return x_blk + w_blk + b_blk + oy + oh + scratch


def _cell_vmem_estimate(B, I, th, dot_dtype):
    db = jnp.dtype(dot_dtype).itemsize
    pack = max(1, 4 // db)
    return (2 * _pad(B, 8) * _pad(I, 128) * 4
            + 2 * _pad(I, 8 * pack) * _pad(th, 128) * db
            + 2 * 8 * _pad(th, 128) * 4
            + 8 * _pad(B, 8) * _pad(th, 128) * 4)


# ----------------------------------------------------------------------------
# Wrappers
# ----------------------------------------------------------------------------

def snu_sequence(xs, weight, bias, decay, *, max_tile_h=512, min_h_tiles=1,
                 time_block=None, dot_dtype=jnp.bfloat16,
                 y_dtype=jnp.float32, h_dtype=jnp.float32):
    """Run the SNU cell over a whole sequence in one pallas_call.

    Args:
      xs: (T, B, I) inputs (float32). weight: (I, H). bias: (1, H) or None.
      decay: scalar.  y_dtype/h_dtype: output trace dtypes (use bf16 to halve
      HBM writeback; spikes are exactly representable in bf16).
    Returns:
      (ys, hs): each (T, B, H) — per-step spikes and membrane voltages.
    """
    T, B, I = xs.shape
    Iw, H = weight.shape
    assert I == Iw
    if bias is None:  # useBias=False
        bias = jnp.zeros((1, H), jnp.float32)
    bias = jnp.asarray(bias, jnp.float32).reshape(1, H)

    th = _pick_tile_h(H, max_tile_h, min_h_tiles)
    tb = _pick_time_block(T, B) if time_block is None else time_block
    assert H % th == 0 and T % tb == 0
    assert (tb * B) % 8 == 0 or tb * B == T * B, "time chunk must be sublane-aligned"
    # Time-chunk axis MUST be innermost and sequential (carried VMEM state).
    grid = (H // th, T // tb)

    # Only W is pre-cast; x stays f32 in HBM and is cast in-kernel.
    w_c = weight.astype(dot_dtype)
    xs_flat = xs.astype(jnp.float32).reshape(T * B, I)  # free, row-major view

    kernel = functools.partial(_snu_seq_kernel, decay=float(decay))
    est = _seq_vmem_estimate(tb, B, I, th, dot_dtype, y_dtype, h_dtype)

    ys, hs = pl.pallas_call(
        kernel,
        out_shape=(
            jax.ShapeDtypeStruct((T, B, H), y_dtype),
            jax.ShapeDtypeStruct((T, B, H), h_dtype),
        ),
        grid_spec=pltpu.PrefetchScalarGridSpec(
            num_scalar_prefetch=0,
            grid=grid,
            in_specs=[
                pl.BlockSpec((tb * B, I), lambda j, c: (c, 0)),   # x chunk (f32)
                pl.BlockSpec((I, th), lambda j, c: (0, j)),       # W (resident over c)
                pl.BlockSpec((1, th), lambda j, c: (0, j)),       # bias (resident over c)
            ],
            out_specs=[
                pl.BlockSpec((tb, B, th), lambda j, c: (c, 0, j)),   # y chunk
                pl.BlockSpec((tb, B, th), lambda j, c: (c, 0, j)),   # h chunk
            ],
            scratch_shapes=[
                pltpu.VMEM((B, th), jnp.float32),        # carried hidden state
                pltpu.VMEM((B, th), jnp.float32),        # carried spike output
                pltpu.VMEM((tb * B, th), jnp.float32),   # pre-activation chunk
            ],
        ),
        compiler_params=pltpu.CompilerParams(
            dimension_semantics=("parallel", "arbitrary"),
            vmem_limit_bytes=_vmem_limit_bytes(est),
        ),
    )(xs_flat, w_c, bias)
    return ys, hs


def snu_cell(x, weight, bias, decay, hidden=None, output=None, *,
             max_tile_h=512, dot_dtype=jnp.bfloat16):
    """Single SNU timestep. Returns (output, hidden) like the PyTorch module."""
    B, I = x.shape
    Iw, H = weight.shape
    assert I == Iw
    if bias is None:
        bias = jnp.zeros((1, H), jnp.float32)
    bias = jnp.asarray(bias, jnp.float32).reshape(1, H)

    th = _pick_tile_h(H, max_tile_h)
    assert H % th == 0
    grid = (H // th,)

    x_c = x.astype(jnp.float32)      # cast to bf16 happens in-kernel
    w_c = weight.astype(dot_dtype)

    out_shape = (
        jax.ShapeDtypeStruct((B, H), jnp.float32),
        jax.ShapeDtypeStruct((B, H), jnp.float32),
    )
    out_specs = [
        pl.BlockSpec((B, th), lambda j: (0, j)),
        pl.BlockSpec((B, th), lambda j: (0, j)),
    ]
    common_in_specs = [
        pl.BlockSpec((B, I), lambda j: (0, 0)),    # x
        pl.BlockSpec((I, th), lambda j: (0, j)),   # W
        pl.BlockSpec((1, th), lambda j: (0, j)),   # bias
    ]
    cparams = pltpu.CompilerParams(
        dimension_semantics=("parallel",),
        vmem_limit_bytes=_vmem_limit_bytes(_cell_vmem_estimate(B, I, th, dot_dtype)),
    )

    if hidden is None:
        kernel = functools.partial(_snu_cell_kernel_nostate, decay=float(decay))
        out_y, out_h = pl.pallas_call(
            kernel,
            out_shape=out_shape,
            grid_spec=pltpu.PrefetchScalarGridSpec(
                num_scalar_prefetch=0, grid=grid,
                in_specs=common_in_specs, out_specs=out_specs),
            compiler_params=cparams,
        )(x_c, w_c, bias)
        return out_y, out_h

    assert output is not None
    kernel = functools.partial(_snu_cell_kernel, decay=float(decay))
    state_specs = [
        pl.BlockSpec((B, th), lambda j: (0, j)),   # h_prev
        pl.BlockSpec((B, th), lambda j: (0, j)),   # y_prev
    ]
    out_y, out_h = pl.pallas_call(
        kernel,
        out_shape=out_shape,
        grid_spec=pltpu.PrefetchScalarGridSpec(
            num_scalar_prefetch=0, grid=grid,
            in_specs=common_in_specs + state_specs, out_specs=out_specs),
        compiler_params=cparams,
    )(x_c, w_c, bias, hidden.astype(jnp.float32), output.astype(jnp.float32))
    return out_y, out_h


# ----------------------------------------------------------------------------
# Pure-JAX reference (same bf16-dot / f32-accumulate numerics as the kernel)
# ----------------------------------------------------------------------------

def _reference_step(x, weight, bias, decay, hidden, output, dot_dtype=jnp.bfloat16):
    pre = jnp.dot(x.astype(dot_dtype), weight.astype(dot_dtype),
                  preferred_element_type=jnp.float32)
    if hidden is None:
        h = jnp.maximum(pre, 0.0)
    else:
        h = jnp.maximum(pre + decay * hidden * (1.0 - output), 0.0)
    y = (h + bias > 0.0).astype(jnp.float32)
    return y, h


if __name__ == "__main__":
    key = jax.random.PRNGKey(0)
    k_w, k_b, k_x = jax.random.split(key, 3)

    T, batch, input_size, hidden_size = 6, 8, 32, 256
    decay = 0.8

    # Params matching nn.init.normal_(mean=0.1, std=0.1)
    weight = 0.1 + 0.1 * jax.random.normal(k_w, (input_size, hidden_size), jnp.float32)
    bias = 0.1 + 0.1 * jax.random.normal(k_b, (1, hidden_size), jnp.float32)
    xs = jax.random.normal(k_x, (T, batch, input_size), jnp.float32)

    # ---- fused-sequence kernel ----
    ys, hs = snu_sequence(xs, weight, bias, decay)
    jax.block_until_ready((ys, hs))

    # Reference: unrolled per-step loop
    ys_ref, hs_ref = [], []
    h = y = None
    for t in range(T):
        y, h = _reference_step(xs[t], weight, bias, decay, h, y)
        ys_ref.append(y)
        hs_ref.append(h)
    ys_ref = jnp.stack(ys_ref)
    hs_ref = jnp.stack(hs_ref)

    assert jnp.allclose(hs, hs_ref, atol=1e-3, rtol=1e-3), "sequence hidden mismatch"
    # Spikes: compare only away from the numerically ambiguous threshold boundary.
    safe = jnp.abs(hs_ref + bias[None]) > 1e-3
    assert bool(jnp.all(jnp.where(safe, ys == ys_ref, True))), "sequence spike mismatch"

    # ---- single-step cell (module-parity API) ----
    y0, h0 = snu_cell(xs[0], weight, bias, decay, hidden=None, output=None)
    y1, h1 = snu_cell(xs[1], weight, bias, decay, hidden=h0, output=y0)
    jax.block_until_ready((y1, h1))

    ry0, rh0 = _reference_step(xs[0], weight, bias, decay, None, None)
    ry1, rh1 = _reference_step(xs[1], weight, bias, decay, h0, y0)
    assert jnp.allclose(h0, rh0, atol=1e-3, rtol=1e-3), "cell step-0 hidden mismatch"
    assert jnp.allclose(h1, rh1, atol=1e-3, rtol=1e-3), "cell step-1 hidden mismatch"
    safe0 = jnp.abs(rh0 + bias) > 1e-3
    safe1 = jnp.abs(rh1 + bias) > 1e-3
    assert bool(jnp.all(jnp.where(safe0, y0 == ry0, True))), "cell step-0 spike mismatch"
    assert bool(jnp.all(jnp.where(safe1, y1 == ry1, True))), "cell step-1 spike mismatch"

    print("KERNEL_OK")
</pallas_src>

<mosaic_0001>
module attributes {stable_mosaic.version = 11 : i64} {
  func.func @_snu_seq_kernel(%arg0: i32, %arg1: i32, %arg2: memref<48x32xf32, #tpu.memory_space<vmem>>, %arg3: memref<32x256xbf16, #tpu.memory_space<vmem>>, %arg4: memref<1x256xf32, #tpu.memory_space<vmem>>, %arg5: memref<6x8x256xf32, #tpu.memory_space<vmem>>, %arg6: memref<6x8x256xf32, #tpu.memory_space<vmem>>, %arg7: memref<8x256xf32, #tpu.memory_space<vmem>>, %arg8: memref<8x256xf32, #tpu.memory_space<vmem>>, %arg9: memref<48x256xf32, #tpu.memory_space<vmem>>) attributes {dimension_semantics = [#tpu.dimension_semantics<parallel>, #tpu.dimension_semantics<arbitrary>], iteration_bounds = array<i64: 1, 1>, scalar_prefetch = 0 : i64, scratch_operands = 3 : i64, tpu.core_type = #tpu.core_type<tc>, window_params = [{transform_indices = @transform_0, window_bounds = array<i64: 48, 32>}, {transform_indices = @transform_1, window_bounds = array<i64: 32, 256>}, {transform_indices = @transform_2, window_bounds = array<i64: 1, 256>}, {transform_indices = @transform_3, window_bounds = array<i64: 6, 8, 256>}, {transform_indices = @transform_4, window_bounds = array<i64: 6, 8, 256>}]} {
    %c0_i32 = arith.constant 0 : i32
    %0 = arith.cmpi eq, %arg1, %c0_i32 : i32
    %1 = arith.extui %0 : i1 to i32
    %c0_i32_0 = arith.constant 0 : i32
    %2 = arith.cmpi ne, %1, %c0_i32_0 : i32
    scf.if %2 {
      %cst_77 = arith.constant 0.000000e+00 : f32
      %165 = vector.broadcast %cst_77 : f32 to vector<8x256xf32>
      %c0_78 = arith.constant 0 : index
      %c0_79 = arith.constant 0 : index
      %166 = vector.load %arg7[%c0_78, %c0_79] : memref<8x256xf32, #tpu.memory_space<vmem>>, vector<8x256xf32>
      tpu.vector_store %arg7[%c0_78, %c0_79], %165 {strides = array<i32>} : memref<8x256xf32, #tpu.memory_space<vmem>>, vector<8x256xf32>,
      %cst_80 = arith.constant 0.000000e+00 : f32
      %167 = vector.broadcast %cst_80 : f32 to vector<8x256xf32>
      %c0_81 = arith.constant 0 : index
      %c0_82 = arith.constant 0 : index
      %168 = vector.load %arg8[%c0_81, %c0_82] : memref<8x256xf32, #tpu.memory_space<vmem>>, vector<8x256xf32>
      tpu.vector_store %arg8[%c0_81, %c0_82], %167 {strides = array<i32>} : memref<8x256xf32, #tpu.memory_space<vmem>>, vector<8x256xf32>,
    } else {
    }
    %c0 = arith.constant 0 : index
    %c0_1 = arith.constant 0 : index
    %3 = vector.load %arg2[%c0, %c0_1] : memref<48x32xf32, #tpu.memory_space<vmem>>, vector<48x32xf32>
    %4 = arith.truncf %3 : vector<48x32xf32> to vector<48x32xbf16>
    %c0_2 = arith.constant 0 : index
    %c0_3 = arith.constant 0 : index
    %5 = vector.load %arg3[%c0_2, %c0_3] : memref<32x256xbf16, #tpu.memory_space<vmem>>, vector<32x256xbf16>
    %cst = arith.constant dense<0.000000e+00> : vector<48x256xf32>
    %6 = tpu.matmul %4, %5, %cst {dimension_numbers = #tpu.dot_dimension_numbers<[1], [0], [0], [1], [0, 0, 1, 1], [], []>} : vector<48x32xbf16>, vector<32x256xbf16>, vector<48x256xf32> -> vector<48x256xf32>
    %c0_4 = arith.constant 0 : index
    %c0_5 = arith.constant 0 : index
    %7 = vector.load %arg9[%c0_4, %c0_5] : memref<48x256xf32, #tpu.memory_space<vmem>>, vector<48x256xf32>
    tpu.vector_store %arg9[%c0_4, %c0_5], %6 {strides = array<i32>} : memref<48x256xf32, #tpu.memory_space<vmem>>, vector<48x256xf32>,
    %c0_6 = arith.constant 0 : index
    %c0_7 = arith.constant 0 : index
    %8 = vector.load %arg4[%c0_6, %c0_7] : memref<1x256xf32, #tpu.memory_space<vmem>>, vector<1x256xf32>
    %cst_8 = arith.constant 0.000000e+00 : f32
    %9 = vector.broadcast %cst_8 : f32 to vector<1x256xf32>
    %10 = arith.subf %9, %8 : vector<1x256xf32>
    %c0_9 = arith.constant 0 : index
    %c0_10 = arith.constant 0 : index
    %11 = vector.load %arg7[%c0_9, %c0_10] : memref<8x256xf32, #tpu.memory_space<vmem>>, vector<8x256xf32>
    %c0_11 = arith.constant 0 : index
    %c0_12 = arith.constant 0 : index
    %12 = vector.load %arg8[%c0_11, %c0_12] : memref<8x256xf32, #tpu.memory_space<vmem>>, vector<8x256xf32>
    %c0_i32_13 = arith.constant 0 : i32
    %c8_i32 = arith.constant 8 : i32
    %13 = arith.muli %c0_i32_13, %c8_i32 : i32
    %14 = tpu.assume_multiple %13, 8 : i32
    %15 = arith.index_cast %14 : i32 to index
    %c0_14 = arith.constant 0 : index
    %16 = vector.load %arg9[%15, %c0_14] : memref<48x256xf32, #tpu.memory_space<vmem>>, vector<8x256xf32>
    %cst_15 = arith.constant 0.000000e+00 : f32
    %17 = vector.broadcast %cst_15 : f32 to vector<8x256xf32>
    %18 = arith.cmpf ogt, %12, %17 : vector<8x256xf32>
    %cst_16 = arith.constant 8.000000e-01 : f32
    %19 = vector.broadcast %cst_16 : f32 to vector<8x256xf32>
    %20 = arith.mulf %19, %11 : vector<8x256xf32>
    %cst_17 = arith.constant 0.000000e+00 : f32
    %21 = vector.broadcast %cst_17 : f32 to vector<8x256xf32>
    %22 = arith.select %18, %21, %20 : vector<8x256xi1>, vector<8x256xf32>
    %23 = arith.addf %16, %22 : vector<8x256xf32>
    %cst_18 = arith.constant 0.000000e+00 : f32
    %24 = vector.broadcast %cst_18 : f32 to vector<8x256xf32>
    %25 = arith.maximumf %23, %24 : vector<8x256xf32>
    %26 = vector.broadcast %10 : vector<1x256xf32> to vector<8x256xf32>
    %27 = arith.cmpf ogt, %25, %26 : vector<8x256xf32>
    %28 = arith.extui %27 : vector<8x256xi1> to vector<8x256xi32>
    %29 = arith.sitofp %28 : vector<8x256xi32> to vector<8x256xf32>
    %30 = arith.index_cast %c0_i32_13 : i32 to index
    %c0_19 = arith.constant 0 : index
    %c0_20 = arith.constant 0 : index
    %31 = vector.load %arg6[%30, %c0_19, %c0_20] : memref<6x8x256xf32, #tpu.memory_space<vmem>>, vector<1x8x256xf32>
    %32 = vector.shape_cast %31 : vector<1x8x256xf32> to vector<8x256xf32>
    %33 = vector.shape_cast %25 : vector<8x256xf32> to vector<1x8x256xf32>
    tpu.vector_store %arg6[%30, %c0_19, %c0_20], %33 {strides = array<i32>} : memref<6x8x256xf32, #tpu.memory_space<vmem>>, vector<1x8x256xf32>,
    %34 = arith.index_cast %c0_i32_13 : i32 to index
    %c0_21 = arith.constant 0 : index
    %c0_22 = arith.constant 0 : index
    %35 = vector.load %arg5[%34, %c0_21, %c0_22] : memref<6x8x256xf32, #tpu.memory_space<vmem>>, vector<1x8x256xf32>
    %36 = vector.shape_cast %35 : vector<1x8x256xf32> to vector<8x256xf32>
    %37 = vector.shape_cast %29 : vector<8x256xf32> to vector<1x8x256xf32>
    tpu.vector_store %arg5[%34, %c0_21, %c0_22], %37 {strides = array<i32>} : memref<6x8x256xf32, #tpu.memory_space<vmem>>, vector<1x8x256xf32>,
    %c1_i32 = arith.constant 1 : i32
    %c8_i32_23 = arith.constant 8 : i32
    %38 = arith.muli %c1_i32, %c8_i32_23 : i32
    %39 = tpu.assume_multiple %38, 8 : i32
    %40 = arith.index_cast %39 : i32 to index
    %c0_24 = arith.constant 0 : index
    %41 = vector.load %arg9[%40, %c0_24] : memref<48x256xf32, #tpu.memory_space<vmem>>, vector<8x256xf32>
    %cst_25 = arith.constant 0.000000e+00 : f32
    %42 = vector.broadcast %cst_25 : f32 to vector<8x256xf32>
    %43 = arith.cmpf ogt, %29, %42 : vector<8x256xf32>
    %cst_26 = arith.constant 8.000000e-01 : f32
    %44 = vector.broadcast %cst_26 : f32 to vector<8x256xf32>
    %45 = arith.mulf %44, %25 : vector<8x256xf32>
    %cst_27 = arith.constant 0.000000e+00 : f32
    %46 = vector.broadcast %cst_27 : f32 to vector<8x256xf32>
    %47 = arith.select %43, %46, %45 : vector<8x256xi1>, vector<8x256xf32>
    %48 = arith.addf %41, %47 : vector<8x256xf32>
    %cst_28 = arith.constant 0.000000e+00 : f32
    %49 = vector.broadcast %cst_28 : f32 to vector<8x256xf32>
    %50 = arith.maximumf %48, %49 : vector<8x256xf32>
    %51 = vector.broadcast %10 : vector<1x256xf32> to vector<8x256xf32>
    %52 = arith.cmpf ogt, %50, %51 : vector<8x256xf32>
    %53 = arith.extui %52 : vector<8x256xi1> to vector<8x256xi32>
    %54 = arith.sitofp %53 : vector<8x256xi32> to vector<8x256xf32>
    %55 = arith.index_cast %c1_i32 : i32 to index
    %c0_29 = arith.constant 0 : index
    %c0_30 = arith.constant 0 : index
    %56 = vector.load %arg6[%55, %c0_29, %c0_30] : memref<6x8x256xf32, #tpu.memory_space<vmem>>, vector<1x8x256xf32>
    %57 = vector.shape_cast %56 : vector<1x8x256xf32> to vector<8x256xf32>
    %58 = vector.shape_cast %50 : vector<8x256xf32> to vector<1x8x256xf32>
    tpu.vector_store %arg6[%55, %c0_29, %c0_30], %58 {strides = array<i32>} : memref<6x8x256xf32, #tpu.memory_space<vmem>>, vector<1x8x256xf32>,
    %59 = arith.index_cast %c1_i32 : i32 to index
    %c0_31 = arith.constant 0 : index
    %c0_32 = arith.constant 0 : index
    %60 = vector.load %arg5[%59, %c0_31, %c0_32] : memref<6x8x256xf32, #tpu.memory_space<vmem>>, vector<1x8x256xf32>
    %61 = vector.shape_cast %60 : vector<1x8x256xf32> to vector<8x256xf32>
    %62 = vector.shape_cast %54 : vector<8x256xf32> to vector<1x8x256xf32>
    tpu.vector_store %arg5[%59, %c0_31, %c0_32], %62 {strides = array<i32>} : memref<6x8x256xf32, #tpu.memory_space<vmem>>, vector<1x8x256xf32>,
    %c2_i32 = arith.constant 2 : i32
    %c8_i32_33 = arith.constant 8 : i32
    %63 = arith.muli %c2_i32, %c8_i32_33 : i32
    %64 = tpu.assume_multiple %63, 8 : i32
    %65 = arith.index_cast %64 : i32 to index
    %c0_34 = arith.constant 0 : index
    %66 = vector.load %arg9[%65, %c0_34] : memref<48x256xf32, #tpu.memory_space<vmem>>, vector<8x256xf32>
    %cst_35 = arith.constant 0.000000e+00 : f32
    %67 = vector.broadcast %cst_35 : f32 to vector<8x256xf32>
    %68 = arith.cmpf ogt, %54, %67 : vector<8x256xf32>
    %cst_36 = arith.constant 8.000000e-01 : f32
    %69 = vector.broadcast %cst_36 : f32 to vector<8x256xf32>
    %70 = arith.mulf %69, %50 : vector<8x256xf32>
    %cst_37 = arith.constant 0.000000e+00 : f32
    %71 = vector.broadcast %cst_37 : f32 to vector<8x256xf32>
    %72 = arith.select %68, %71, %70 : vector<8x256xi1>, vector<8x256xf32>
    %73 = arith.addf %66, %72 : vector<8x256xf32>
    %cst_38 = arith.constant 0.000000e+00 : f32
    %74 = vector.broadcast %cst_38 : f32 to vector<8x256xf32>
    %75 = arith.maximumf %73, %74 : vector<8x256xf32>
    %76 = vector.broadcast %10 : vector<1x256xf32> to vector<8x256xf32>
    %77 = arith.cmpf ogt, %75, %76 : vector<8x256xf32>
    %78 = arith.extui %77 : vector<8x256xi1> to vector<8x256xi32>
    %79 = arith.sitofp %78 : vector<8x256xi32> to vector<8x256xf32>
    %80 = arith.index_cast %c2_i32 : i32 to index
    %c0_39 = arith.constant 0 : index
    %c0_40 = arith.constant 0 : index
    %81 = vector.load %arg6[%80, %c0_39, %c0_40] : memref<6x8x256xf32, #tpu.memory_space<vmem>>, vector<1x8x256xf32>
    %82 = vector.shape_cast %81 : vector<1x8x256xf32> to vector<8x256xf32>
    %83 = vector.shape_cast %75 : vector<8x256xf32> to vector<1x8x256xf32>
    tpu.vector_store %arg6[%80, %c0_39, %c0_40], %83 {strides = array<i32>} : memref<6x8x256xf32, #tpu.memory_space<vmem>>, vector<1x8x256xf32>,
    %84 = arith.index_cast %c2_i32 : i32 to index
    %c0_41 = arith.constant 0 : index
    %c0_42 = arith.constant 0 : index
    %85 = vector.load %arg5[%84, %c0_41, %c0_42] : memref<6x8x256xf32, #tpu.memory_space<vmem>>, vector<1x8x256xf32>
    %86 = vector.shape_cast %85 : vector<1x8x256xf32> to vector<8x256xf32>
    %87 = vector.shape_cast %79 : vector<8x256xf32> to vector<1x8x256xf32>
    tpu.vector_store %arg5[%84, %c0_41, %c0_42], %87 {strides = array<i32>} : memref<6x8x256xf32, #tpu.memory_space<vmem>>, vector<1x8x256xf32>,
    %c3_i32 = arith.constant 3 : i32
    %c8_i32_43 = arith.constant 8 : i32
    %88 = arith.muli %c3_i32, %c8_i32_43 : i32
    %89 = tpu.assume_multiple %88, 8 : i32
    %90 = arith.index_cast %89 : i32 to index
    %c0_44 = arith.constant 0 : index
    %91 = vector.load %arg9[%90, %c0_44] : memref<48x256xf32, #tpu.memory_space<vmem>>, vector<8x256xf32>
    %cst_45 = arith.constant 0.000000e+00 : f32
    %92 = vector.broadcast %cst_45 : f32 to vector<8x256xf32>
    %93 = arith.cmpf ogt, %79, %92 : vector<8x256xf32>
    %cst_46 = arith.constant 8.000000e-01 : f32
    %94 = vector.broadcast %cst_46 : f32 to vector<8x256xf32>
    %95 = arith.mulf %94, %75 : vector<8x256xf32>
    %cst_47 = arith.constant 0.000000e+00 : f32
    %96 = vector.broadcast %cst_47 : f32 to vector<8x256xf32>
    %97 = arith.select %93, %96, %95 : vector<8x256xi1>, vector<8x256xf32>
    %98 = arith.addf %91, %97 : vector<8x256xf32>
    %cst_48 = arith.constant 0.000000e+00 : f32
    %99 = vector.broadcast %cst_48 : f32 to vector<8x256xf32>
    %100 = arith.maximumf %98, %99 : vector<8x256xf32>
    %101 = vector.broadcast %10 : vector<1x256xf32> to vector<8x256xf32>
    %102 = arith.cmpf ogt, %100, %101 : vector<8x256xf32>
    %103 = arith.extui %102 : vector<8x256xi1> to vector<8x256xi32>
    %104 = arith.sitofp %103 : vector<8x256xi32> to vector<8x256xf32>
    %105 = arith.index_cast %c3_i32 : i32 to index
    %c0_49 = arith.constant 0 : index
    %c0_50 = arith.constant 0 : index
    %106 = vector.load %arg6[%105, %c0_49, %c0_50] : memref<6x8x256xf32, #tpu.memory_space<vmem>>, vector<1x8x256xf32>
    %107 = vector.shape_cast %106 : vector<1x8x256xf32> to vector<8x256xf32>
    %108 = vector.shape_cast %100 : vector<8x256xf32> to vector<1x8x256xf32>
    tpu.vector_store %arg6[%105, %c0_49, %c0_50], %108 {strides = array<i32>} : memref<6x8x256xf32, #tpu.memory_space<vmem>>, vector<1x8x256xf32>,
    %109 = arith.index_cast %c3_i32 : i32 to index
    %c0_51 = arith.constant 0 : index
    %c0_52 = arith.constant 0 : index
    %110 = vector.load %arg5[%109, %c0_51, %c0_52] : memref<6x8x256xf32, #tpu.memory_space<vmem>>, vector<1x8x256xf32>
    %111 = vector.shape_cast %110 : vector<1x8x256xf32> to vector<8x256xf32>
    %112 = vector.shape_cast %104 : vector<8x256xf32> to vector<1x8x256xf32>
    tpu.vector_store %arg5[%109, %c0_51, %c0_52], %112 {strides = array<i32>} : memref<6x8x256xf32, #tpu.memory_space<vmem>>, vector<1x8x256xf32>,
    %c4_i32 = arith.constant 4 : i32
    %c8_i32_53 = arith.constant 8 : i32
    %113 = arith.muli %c4_i32, %c8_i32_53 : i32
    %114 = tpu.assume_multiple %113, 8 : i32
    %115 = arith.index_cast %114 : i32 to index
    %c0_54 = arith.constant 0 : index
    %116 = vector.load %arg9[%115, %c0_54] : memref<48x256xf32, #tpu.memory_space<vmem>>, vector<8x256xf32>
    %cst_55 = arith.constant 0.000000e+00 : f32
    %117 = vector.broadcast %cst_55 : f32 to vector<8x256xf32>
    %118 = arith.cmpf ogt, %104, %117 : vector<8x256xf32>
    %cst_56 = arith.constant 8.000000e-01 : f32
    %119 = vector.broadcast %cst_56 : f32 to vector<8x256xf32>
    %120 = arith.mulf %119, %100 : vector<8x256xf32>
    %cst_57 = arith.constant 0.000000e+00 : f32
    %121 = vector.broadcast %cst_57 : f32 to vector<8x256xf32>
    %122 = arith.select %118, %121, %120 : vector<8x256xi1>, vector<8x256xf32>
    %123 = arith.addf %116, %122 : vector<8x256xf32>
    %cst_58 = arith.constant 0.000000e+00 : f32
    %124 = vector.broadcast %cst_58 : f32 to vector<8x256xf32>
    %125 = arith.maximumf %123, %124 : vector<8x256xf32>
    %126 = vector.broadcast %10 : vector<1x256xf32> to vector<8x256xf32>
    %127 = arith.cmpf ogt, %125, %126 : vector<8x256xf32>
    %128 = arith.extui %127 : vector<8x256xi1> to vector<8x256xi32>
    %129 = arith.sitofp %128 : vector<8x256xi32> to vector<8x256xf32>
    %130 = arith.index_cast %c4_i32 : i32 to index
    %c0_59 = arith.constant 0 : index
    %c0_60 = arith.constant 0 : index
    %131 = vector.load %arg6[%130, %c0_59, %c0_60] : memref<6x8x256xf32, #tpu.memory_space<vmem>>, vector<1x8x256xf32>
    %132 = vector.shape_cast %131 : vector<1x8x256xf32> to vector<8x256xf32>
    %133 = vector.shape_cast %125 : vector<8x256xf32> to vector<1x8x256xf32>
    tpu.vector_store %arg6[%130, %c0_59, %c0_60], %133 {strides = array<i32>} : memref<6x8x256xf32, #tpu.memory_space<vmem>>, vector<1x8x256xf32>,
    %134 = arith.index_cast %c4_i32 : i32 to index
    %c0_61 = arith.constant 0 : index
    %c0_62 = arith.constant 0 : index
    %135 = vector.load %arg5[%134, %c0_61, %c0_62] : memref<6x8x256xf32, #tpu.memory_space<vmem>>, vector<1x8x256xf32>
    %136 = vector.shape_cast %135 : vector<1x8x256xf32> to vector<8x256xf32>
    %137 = vector.shape_cast %129 : vector<8x256xf32> to vector<1x8x256xf32>
    tpu.vector_store %arg5[%134, %c0_61, %c0_62], %137 {strides = array<i32>} : memref<6x8x256xf32, #tpu.memory_space<vmem>>, vector<1x8x256xf32>,
    %c5_i32 = arith.constant 5 : i32
    %c8_i32_63 = arith.constant 8 : i32
    %138 = arith.muli %c5_i32, %c8_i32_63 : i32
    %139 = tpu.assume_multiple %138, 8 : i32
    %140 = arith.index_cast %139 : i32 to index
    %c0_64 = arith.constant 0 : index
    %141 = vector.load %arg9[%140, %c0_64] : memref<48x256xf32, #tpu.memory_space<vmem>>, vector<8x256xf32>
    %cst_65 = arith.constant 0.000000e+00 : f32
    %142 = vector.broadcast %cst_65 : f32 to vector<8x256xf32>
    %143 = arith.cmpf ogt, %129, %142 : vector<8x256xf32>
    %cst_66 = arith.constant 8.000000e-01 : f32
    %144 = vector.broadcast %cst_66 : f32 to vector<8x256xf32>
    %145 = arith.mulf %144, %125 : vector<8x256xf32>
    %cst_67 = arith.constant 0.000000e+00 : f32
    %146 = vector.broadcast %cst_67 : f32 to vector<8x256xf32>
    %147 = arith.select %143, %146, %145 : vector<8x256xi1>, vector<8x256xf32>
    %148 = arith.addf %141, %147 : vector<8x256xf32>
    %cst_68 = arith.constant 0.000000e+00 : f32
    %149 = vector.broadcast %cst_68 : f32 to vector<8x256xf32>
    %150 = arith.maximumf %148, %149 : vector<8x256xf32>
    %151 = vector.broadcast %10 : vector<1x256xf32> to vector<8x256xf32>
    %152 = arith.cmpf ogt, %150, %151 : vector<8x256xf32>
    %153 = arith.extui %152 : vector<8x256xi1> to vector<8x256xi32>
    %154 = arith.sitofp %153 : vector<8x256xi32> to vector<8x256xf32>
    %155 = arith.index_cast %c5_i32 : i32 to index
    %c0_69 = arith.constant 0 : index
    %c0_70 = arith.constant 0 : index
    %156 = vector.load %arg6[%155, %c0_69, %c0_70] : memref<6x8x256xf32, #tpu.memory_space<vmem>>, vector<1x8x256xf32>
    %157 = vector.shape_cast %156 : vector<1x8x256xf32> to vector<8x256xf32>
    %158 = vector.shape_cast %150 : vector<8x256xf32> to vector<1x8x256xf32>
    tpu.vector_store %arg6[%155, %c0_69, %c0_70], %158 {strides = array<i32>} : memref<6x8x256xf32, #tpu.memory_space<vmem>>, vector<1x8x256xf32>,
    %159 = arith.index_cast %c5_i32 : i32 to index
    %c0_71 = arith.constant 0 : index
    %c0_72 = arith.constant 0 : index
    %160 = vector.load %arg5[%159, %c0_71, %c0_72] : memref<6x8x256xf32, #tpu.memory_space<vmem>>, vector<1x8x256xf32>
    %161 = vector.shape_cast %160 : vector<1x8x256xf32> to vector<8x256xf32>
    %162 = vector.shape_cast %154 : vector<8x256xf32> to vector<1x8x256xf32>
    tpu.vector_store %arg5[%159, %c0_71, %c0_72], %162 {strides = array<i32>} : memref<6x8x256xf32, #tpu.memory_space<vmem>>, vector<1x8x256xf32>,
    %c6_i32 = arith.constant 6 : i32
    %c0_73 = arith.constant 0 : index
    %c0_74 = arith.constant 0 : index
    %163 = vector.load %arg7[%c0_73, %c0_74] : memref<8x256xf32, #tpu.memory_space<vmem>>, vector<8x256xf32>
    tpu.vector_store %arg7[%c0_73, %c0_74], %150 {strides = array<i32>} : memref<8x256xf32, #tpu.memory_space<vmem>>, vector<8x256xf32>,
    %c0_75 = arith.constant 0 : index
    %c0_76 = arith.constant 0 : index
    %164 = vector.load %arg8[%c0_75, %c0_76] : memref<8x256xf32, #tpu.memory_space<vmem>>, vector<8x256xf32>
    tpu.vector_store %arg8[%c0_75, %c0_76], %154 {strides = array<i32>} : memref<8x256xf32, #tpu.memory_space<vmem>>, vector<8x256xf32>,
    return
  }
  func.func @transform_0(%arg0: i32, %arg1: i32) -> (i32, i32) {
    %c0_i32 = arith.constant 0 : i32
    %c0_i32_0 = arith.constant 0 : i32
    return %arg1, %c0_i32 : i32, i32
  }
  func.func @transform_1(%arg0: i32, %arg1: i32) -> (i32, i32) {
    %c0_i32 = arith.constant 0 : i32
    %c0_i32_0 = arith.constant 0 : i32
    return %c0_i32, %arg0 : i32, i32
  }
  func.func @transform_2(%arg0: i32, %arg1: i32) -> (i32, i32) {
    %c0_i32 = arith.constant 0 : i32
    %c0_i32_0 = arith.constant 0 : i32
    return %c0_i32, %arg0 : i32, i32
  }
  func.func @transform_3(%arg0: i32, %arg1: i32) -> (i32, i32, i32) {
    %c0_i32 = arith.constant 0 : i32
    %c0_i32_0 = arith.constant 0 : i32
    return %arg1, %c0_i32, %arg0 : i32, i32, i32
  }
  func.func @transform_4(%arg0: i32, %arg1: i32) -> (i32, i32, i32) {
    %c0_i32 = arith.constant 0 : i32
    %c0_i32_0 = arith.constant 0 : i32
    return %arg1, %c0_i32, %arg0 : i32, i32, i32
  }
}

</mosaic_0001>

<bundles_post_ra>
// kernel: tpu_custom_call.1
= control target key start
LH: loop header
LB: loop body
LE: loop exit
PB: predicated region body
PF: predicated region fallthrough
CT: control target
= control target key end

     0   :  { %10 = vsyncpa [#allocation6], 0  ;;  %v442_v2 = vmov 0   ;;  %s540_s0 = inlined_call_operand.vmem [shape: f32[48,32], index: 0, kind: input, shape index: {}]   ;;  %s541_s1 = inlined_call_operand.vmem [shape: bf16[32,256], index: 1, kind: input, shape index: {}]   ;;  %s542_s2 = inlined_call_operand.vmem [shape: f32[1,256], index: 2, kind: input, shape index: {}]   ;;  %s543_s3 = inlined_call_operand.hbm [shape: f32[6,8,256], index: 3, kind: output, shape index: {0}]   ;;  %s544_s4 = inlined_call_operand.hbm [shape: f32[6,8,256], index: 4, kind: output, shape index: {1}]  }
   0x1   :  { %v392_v0 = vld [vmem:[%s541_s1 + $0x14] ss:$8 sps:$4 sm:$0xff]   ;;  %v394_v1 = vld [vmem:[%s541_s1 + $0x10] ss:$8 sps:$4 sm:$0xff]   ;;  %102 = vmatprep.mubr.bf16.mxu0 %v442_v2  ;;  %112 = vmatprep.mubr.bf16.mxu1 %v442_v2  ;;  %v395_v3 = vld [vmem:[%s541_s1 + $0x4] ss:$8 sps:$4 sm:$0xff]  }
   0x2   :  { %82 = vmatprep.subr.bf16.mxu0 %v392_v0  ;;  %v397_v4 = vld [vmem:[%s541_s1] ss:$8 sps:$4 sm:$0xff]   ;;  %382 = vmatprep.subr.bf16.mxu1 %v392_v0  ;;  %v29_v7 = vld [vmem:[%s540_s0 + $0x10] sm:$0xff]  ;;  %v30_v8 = vld [vmem:[%s540_s0 + $0x18] sm:$0xff] }
   0x3   :  { %v27_v5 = vld [vmem:[%s540_s0] sm:$0xff]  ;;  %83 = vmatpush1.bf16.msra.mxu0 %v394_v1  ;;  %v28_v6 = vld [vmem:[%s540_s0 + $0x8] sm:$0xff]  ;;  %384 = vmatpush1.bf16.msra.mxu1 %v394_v1 }
   0x4   :  { %84 = vmatprep.subr.bf16.mxu0 %v395_v3  ;;  %383 = vmatprep.subr.bf16.mxu1 %v395_v3 }
   0x5   :  { %11 = vsyncpa [#allocation8], 0  ;;  %v33_v9 = vpack.c.bf16 %v28_v6, %v27_v5  ;;  %v34_v10 = vpack.c.bf16 %v30_v8, %v29_v7  ;;  %vm60_vm0 = vcmask 261120   ;;  %v31_v11 = vld [vmem:[%s540_s0 + $0x20] sm:$0xff]  ;;  %v32_v12 = vld [vmem:[%s540_s0 + $0x28] sm:$0xff]  ;;  %v167_v14 = vlaneseq  ;;  %s444_s0 = smov [#allocation7]  }
   0x6   :  { %v35_v13 = vpack.c.bf16 %v32_v12, %v31_v11  ;;  %v145_v16 = vld [vmem:[%s542_s2] sm:$0x3]  ;;  %v443_v28 = vmov 0.0   ;;  %s343_s2 = sshll.u32 %s444_s0, 4  ;;  %s445_s10 = smov [#allocation5]   ;;  %s344_s2 = int_to_ptr.vmem [resolvable:$true] %s343_s2 }
   0x7   :  { %85 = vmatpush1.bf16.msra.mxu0 %v397_v4  ;;  %385 = vmatpush1.bf16.msra.mxu1 %v397_v4  ;;  %v168_v15 = vshrl.u32 %v167_v14, 7  ;;  %v146_v17 = vsub.f32 0.0, %v145_v16  ;;  %s331_s11 = sshll.u32 %s445_s10, 4  ;;  %s398_s12 = scalar_lea.vmem %s344_s2, 1536  ;;  %s332_s11 = int_to_ptr.vmem [resolvable:$true] %s331_s11 }
   0x8   :  { %p399_p0 = scmp.ne.s32.totalorder %s344_s2, %s398_s12  ;;  %p403_p1 = scmp.lt.s32.totalorder %s344_s2, %s344_s2 }
   0x9   :  { %v169_v18 = vsub.s32 0, %v168_v15  ;;  %v173_v19 = vsub.s32 1, %v168_v15  ;;  %p404_p2 = scmp.lt.s32.totalorder %s398_s12, %s398_s12 }
   0xa   :  { %367 = vmatmul.mubr.msk.bf16.vlgmr.msra.gmra.mxu0 %vm60_vm0, %v33_v9  ;;  %368 = vmatmul.mubr.msk.bf16.vlgmr.msra.gmra.mxu1 %vm60_vm0, %v34_v10 }
   0xb   :  { %122 = vmatprep.mubr.bf16.mxu1 %v442_v2  ;;  %v506_v20 = vrot.slane %v146_v17, %v169_v18  ;;  %v508_v23 = vrot.slane %v146_v17, %v173_v19  ;;  %p405_p3 = por %p404_p2, %p403_p1 }
   0xd   :  { %p406_p4 = pnand %p405_p3, %p399_p0 }
  0x12   :  { %369 = vmatmul.mubr.msk.bf16.gmra.mxu1 %vm60_vm0, %v35_v13 }
  0xca   :  { %v104_v21 = vpop.f32.mrf.mxu0  ;;  %v114_v40 = vpop.f32.mrf.mxu1 }
  0xcb   :  { %v164_v22 = vmax.f32 %v104_v21, 0.0 }
  0xcc   :  { %v106_v24 = vpop.f32.mrf.mxu0  ;;  %v116_v46 = vpop.f32.mrf.mxu1 }
  0xcd   :  { %183 = vst [vmem:[#allocation7] sm:$0xff] %v164_v22  ;;  %v165_v25 = vmax.f32 %v106_v24, 0.0  ;;  %vm177_vm1 = vcmp.gt.f32.partialorder %v164_v22, %v506_v20  ;;  %v194_v26 = vmul.f32 0.8, %v164_v22 }
  0xce   :  { %v108_v27 = vpop.f32.mrf.mxu0  ;;  %v370_v29 = vsel %vm177_vm1, 1.0, %v443_v28  ;;  %v118_v52 = vpop.f32.mrf.mxu1 }
  0xcf   :  { %184 = vst [vmem:[#allocation7 + $0x8] sm:$0xff] %v165_v25  ;;  %185 = vst [vmem:[#allocation5] sm:$0xff] %v370_v29  ;;  %vm192_vm2 = vcmp.gt.f32.partialorder %v370_v29, 0.0  ;;  %vm178_vm3 = vcmp.gt.f32.partialorder %v165_v25, %v508_v23  ;;  %v195_v30 = vmul.f32 0.8, %v165_v25 }
  0xd0   :  { %v196_v31 = vsel %vm192_vm2, 0.0, %v194_v26  ;;  %v371_v32 = vsel %vm178_vm3, 1.0, %v443_v28  ;;  %v110_v34 = vpop.f32.mrf.mxu0  ;;  %v120_v58 = vpop.f32.mrf.mxu1 }
  0xd1   :  { %v198_v33 = vadd.f32 %v196_v31, %v108_v27  ;;  %186 = vst [vmem:[#allocation5 + $0x8] sm:$0xff] %v371_v32  ;;  %vm193_vm4 = vcmp.gt.f32.partialorder %v371_v32, 0.0 }
  0xd2   :  { %v197_v35 = vsel %vm193_vm4, 0.0, %v195_v30  ;;  %v124_v0 = vpop.f32.mrf.mxu1 }
  0xd3   :  { %v200_v36 = vmax.f32 %v198_v33, 0.0  ;;  %v199_v37 = vadd.f32 %v197_v35, %v110_v34 }
  0xd4   :  { %v126_v6 = vpop.f32.mrf.mxu1 }
  0xd5   :  { %209 = vst [vmem:[#allocation7 + $0x10] sm:$0xff] %v200_v36  ;;  %v201_v38 = vmax.f32 %v199_v37, 0.0  ;;  %vm202_vm5 = vcmp.gt.f32.partialorder %v200_v36, %v506_v20  ;;  %v221_v39 = vmul.f32 0.8, %v200_v36 }
  0xd6   :  { %v372_v41 = vsel %vm202_vm5, 1.0, %v443_v28  ;;  %v128_v12 = vpop.f32.mrf.mxu1 }
  0xd7   :  { %210 = vst [vmem:[#allocation7 + $0x18] sm:$0xff] %v201_v38  ;;  %212 = vst [vmem:[#allocation5 + $0x10] sm:$0xff] %v372_v41  ;;  %vm219_vm6 = vcmp.gt.f32.partialorder %v372_v41, 0.0  ;;  %vm203_vm7 = vcmp.gt.f32.partialorder %v201_v38, %v508_v23  ;;  %v222_v42 = vmul.f32 0.8, %v201_v38 }
  0xd8   :  { %v223_v43 = vsel %vm219_vm6, 0.0, %v221_v39  ;;  %v373_v44 = vsel %vm203_vm7, 1.0, %v443_v28  ;;  %v130_v18 = vpop.f32.mrf.mxu1 }
  0xd9   :  { %v225_v45 = vadd.f32 %v223_v43, %v114_v40  ;;  %213 = vst [vmem:[#allocation5 + $0x18] sm:$0xff] %v373_v44  ;;  %vm220_vm8 = vcmp.gt.f32.partialorder %v373_v44, 0.0 }
  0xda   :  { %v224_v47 = vsel %vm220_vm8, 0.0, %v222_v42 }
  0xdb   :  { %v227_v48 = vmax.f32 %v225_v45, 0.0  ;;  %v226_v49 = vadd.f32 %v224_v47, %v116_v46 }
  0xdd   :  { %236 = vst [vmem:[#allocation7 + $0x20] sm:$0xff] %v227_v48  ;;  %v228_v50 = vmax.f32 %v226_v49, 0.0  ;;  %vm229_vm9 = vcmp.gt.f32.partialorder %v227_v48, %v506_v20  ;;  %v248_v51 = vmul.f32 0.8, %v227_v48 }
  0xde   :  { %v374_v53 = vsel %vm229_vm9, 1.0, %v443_v28 }
  0xdf   :  { %237 = vst [vmem:[#allocation7 + $0x28] sm:$0xff] %v228_v50  ;;  %239 = vst [vmem:[#allocation5 + $0x20] sm:$0xff] %v374_v53  ;;  %vm246_vm10 = vcmp.gt.f32.partialorder %v374_v53, 0.0  ;;  %vm230_vm11 = vcmp.gt.f32.partialorder %v228_v50, %v508_v23  ;;  %v249_v54 = vmul.f32 0.8, %v228_v50 }
  0xe0   :  { %v250_v55 = vsel %vm246_vm10, 0.0, %v248_v51  ;;  %v375_v56 = vsel %vm230_vm11, 1.0, %v443_v28 }
  0xe1   :  { %v252_v57 = vadd.f32 %v250_v55, %v118_v52  ;;  %240 = vst [vmem:[#allocation5 + $0x28] sm:$0xff] %v375_v56  ;;  %vm247_vm12 = vcmp.gt.f32.partialorder %v375_v56, 0.0 }
  0xe2   :  { %v251_v59 = vsel %vm247_vm12, 0.0, %v249_v54 }
  0xe3   :  { %v254_v60 = vmax.f32 %v252_v57, 0.0  ;;  %v253_v61 = vadd.f32 %v251_v59, %v120_v58 }
  0xe5   :  { %263 = vst [vmem:[#allocation7 + $0x30] sm:$0xff] %v254_v60  ;;  %v255_v62 = vmax.f32 %v253_v61, 0.0  ;;  %vm256_vm13 = vcmp.gt.f32.partialorder %v254_v60, %v506_v20  ;;  %v275_v63 = vmul.f32 0.8, %v254_v60 }
  0xe6   :  { %v376_v1 = vsel %vm256_vm13, 1.0, %v443_v28 }
  0xe7   :  { %264 = vst [vmem:[#allocation7 + $0x38] sm:$0xff] %v255_v62  ;;  %266 = vst [vmem:[#allocation5 + $0x30] sm:$0xff] %v376_v1  ;;  %vm273_vm14 = vcmp.gt.f32.partialorder %v376_v1, 0.0  ;;  %vm257_vm15 = vcmp.gt.f32.partialorder %v255_v62, %v508_v23  ;;  %v276_v2 = vmul.f32 0.8, %v255_v62 }
  0xe8   :  { %v277_v3 = vsel %vm273_vm14, 0.0, %v275_v63  ;;  %v377_v4 = vsel %vm257_vm15, 1.0, %v443_v28 }
  0xe9   :  { %v279_v5 = vadd.f32 %v277_v3, %v124_v0  ;;  %267 = vst [vmem:[#allocation5 + $0x38] sm:$0xff] %v377_v4  ;;  %vm274_vm0 = vcmp.gt.f32.partialorder %v377_v4, 0.0 }
  0xea   :  { %v278_v7 = vsel %vm274_vm0, 0.0, %v276_v2 }
  0xeb   :  { %v281_v8 = vmax.f32 %v279_v5, 0.0  ;;  %v280_v9 = vadd.f32 %v278_v7, %v126_v6 }
  0xed   :  { %290 = vst [vmem:[#allocation7 + $0x40] sm:$0xff] %v281_v8  ;;  %v282_v10 = vmax.f32 %v280_v9, 0.0  ;;  %vm283_vm1 = vcmp.gt.f32.partialorder %v281_v8, %v506_v20  ;;  %v302_v11 = vmul.f32 0.8, %v281_v8 }
  0xee   :  { %v378_v13 = vsel %vm283_vm1, 1.0, %v443_v28 }
  0xef   :  { %291 = vst [vmem:[#allocation7 + $0x48] sm:$0xff] %v282_v10  ;;  %293 = vst [vmem:[#allocation5 + $0x40] sm:$0xff] %v378_v13  ;;  %vm300_vm2 = vcmp.gt.f32.partialorder %v378_v13, 0.0  ;;  %vm284_vm3 = vcmp.gt.f32.partialorder %v282_v10, %v508_v23  ;;  %v303_v14 = vmul.f32 0.8, %v282_v10 }
  0xf0   :  { %v304_v15 = vsel %vm300_vm2, 0.0, %v302_v11  ;;  %v379_v16 = vsel %vm284_vm3, 1.0, %v443_v28 }
  0xf1   :  { %v306_v17 = vadd.f32 %v304_v15, %v128_v12  ;;  %294 = vst [vmem:[#allocation5 + $0x48] sm:$0xff] %v379_v16  ;;  %vm301_vm4 = vcmp.gt.f32.partialorder %v379_v16, 0.0 }
  0xf2   :  { %v305_v19 = vsel %vm301_vm4, 0.0, %v303_v14 }
  0xf3   :  { %v308_v21 = vmax.f32 %v306_v17, 0.0  ;;  %v307_v22 = vadd.f32 %v305_v19, %v130_v18 }
  0xf5   :  { %vm310_vm5 = vcmp.gt.f32.partialorder %v308_v21, %v506_v20  ;;  %317 = vst [vmem:[#allocation7 + $0x50] sm:$0xff] %v308_v21  ;;  %v309_v24 = vmax.f32 %v307_v22, 0.0 }
  0xf6   :  { %v380_v25 = vsel %vm310_vm5, 1.0, %v443_v28 }
  0xf7   :  { %320 = vst [vmem:[#allocation5 + $0x50] sm:$0xff] %v380_v25  ;;  %vm311_vm6 = vcmp.gt.f32.partialorder %v309_v24, %v508_v23  ;;  %318 = vst [vmem:[#allocation7 + $0x58] sm:$0xff] %v309_v24 }
  0xf8   :  { %v381_v26 = vsel %vm311_vm6, 1.0, %v443_v28 }
  0xf9   :  { %409 = shalt.err (!%p406_p4)
}
  0xfa   :  { %s446_s13 = smov 256   ;;  %s447_s14 = smov 16   ;;  %321 = vst [vmem:[#allocation5 + $0x58] sm:$0xff] %v381_v26 }
  0xfb   :  { %349 = dma.vmem_to_hbm [thread:$0]  %s344_s2, 1536, %s544_s4, [#allocation8], %s446_s13, %s446_s13, %s447_s14  }
  0xfc   :  { %s418_s17 = scalar_lea.vmem %s332_s11, 1536  ;;  %p423_p6 = scmp.lt.s32.totalorder %s332_s11, %s332_s11 }
  0xfd   :  { %p419_p5 = scmp.ne.s32.totalorder %s332_s11, %s418_s17  ;;  %p424_p7 = scmp.lt.s32.totalorder %s418_s17, %s418_s17 }
  0xff   :  { %p425_p8 = por %p424_p7, %p423_p6 }
 0x101   :  { %p426_p9 = pnand %p425_p8, %p419_p5 }
 0x103   :  { %429 = shalt.err (!%p426_p9)
}
 0x104   :  { %337 = dma.vmem_to_hbm [thread:$0]  %s332_s11, 1536, %s543_s3, [#allocation6], %s446_s13, %s446_s13, %s447_s14  }
 0x105   :  { %438 = dma.done.wait [#allocation6], 1536  }
 0x106   :  { %439 = vsyncadd [#allocation6], 4294965760 }
 0x107   :  { %440 = dma.done.wait [#allocation8], 1536  }
 0x108   :  { %441 = vsyncadd [#allocation8], 4294965760 }
 0x109   :  { %356 = vsyncpa [#allocation6], 1 }
 0x10a   :  { %357 = vsyncpa [#allocation8], 1 }

</bundles_post_ra>
